<compile_context>
chip_gen: v7x
topology: tpu7x:2x2x1
jax: 0.10.0
libtpu: 0.0.40
codegen_flags: <defaults>
</compile_context>

<pallas_src>
import jax
import jax.numpy as jnp
from jax.experimental import pallas as pl
from jax.experimental.pallas import tpu as pltpu


_TARGET_BLOCK_BYTES = 2 << 20   # ~2 MiB activation block; x+y double-buffered ~8-10 MiB
_MAX_BATCH_ROWS_PER_BLOCK = 32  # bounds the unrolled per-row MXU dot loop


def _choose_tiles(B, C, hw, itemsize):
    """Pick (batch rows per block, lane tile) targeting ~_TARGET_BLOCK_BYTES blocks."""
    lane_budget = max(1024, (_TARGET_BLOCK_BYTES // (C * itemsize)) // 1024 * 1024)
    if hw > lane_budget:
        # Big image: tile the lane axis; remainder block is masked by Pallas.
        return 1, lane_budget
    # Small image: whole lane extent per block; batch several rows to amortize
    # per-grid-step overhead, but keep >= 2 batch steps when B > 1 (v7x has 2 TCs).
    tn = hw
    row_bytes = C * tn * itemsize
    bb = int(max(1, min(B, _TARGET_BLOCK_BYTES // max(row_bytes, 1),
                        _MAX_BATCH_ROWS_PER_BLOCK)))
    if bb >= B and B > 1:
        bb = (B + 1) // 2
    return bb, tn


def _conv1x1_mxu_kernel(w_ref, x_ref, o_ref):
    # w_ref: (C, C); x_ref / o_ref: (Bb, C, TN).
    # Per-row (C, C) @ (C, TN) MXU matmuls: jnp.dot is not batched, and a batched
    # einsum('oc,bcn->bon') would materialize an in-kernel transpose.
    w = w_ref[...]
    for b in range(x_ref.shape[0]):
        o_ref[b] = jnp.dot(
            w, x_ref[b], preferred_element_type=jnp.float32
        ).astype(o_ref.dtype)


def _conv1x1_vpu_kernel(w_ref, x_ref, o_ref):
    # w_ref: (C, C) f32 scalars in SMEM; x_ref / o_ref: (Bb, C, TS, 128) in VMEM.
    # For tiny C the MXU path wastes sublanes (C/8 occupancy) and MXU utilization;
    # instead do C^2 broadcast-FMAs on full (8,128)-dense per-channel slabs.
    C = x_ref.shape[1]
    for co in range(C):
        acc = x_ref[:, 0].astype(jnp.float32) * w_ref[co, 0]
        for ci in range(1, C):
            acc = acc + x_ref[:, ci].astype(jnp.float32) * w_ref[co, ci]
        o_ref[:, co] = acc.astype(o_ref.dtype)


def _run_conv1x1(x, w):
    B, C, H, W = x.shape
    hw = H * W
    itemsize = x.dtype.itemsize
    bb, tn = _choose_tiles(B, C, hw, itemsize)

    # Explicit VMEM budget: x + out blocks, double-buffered, + resident weight + slack.
    block_bytes = bb * C * tn * itemsize
    vmem_needed = 4 * block_bytes + 2 * C * C * 4 + (1 << 20)
    vmem_limit = int(min(max(vmem_needed, 32 << 20), 48 << 20))  # <= 48 MiB (v7x has 64)

    cost = pl.CostEstimate(
        flops=2 * B * C * C * hw,
        transcendentals=0,
        bytes_accessed=2 * B * C * hw * itemsize + C * C * itemsize,
    )
    cparams = pltpu.CompilerParams(
        dimension_semantics=("parallel", "parallel"),  # no reduction grid axis
        vmem_limit_bytes=vmem_limit,
    )

    # VPU broadcast-FMA path for very small channel counts (C<8 f32 / C<16 bf16).
    use_vpu = (C * itemsize < 32) and (hw % 128 == 0)

    if use_vpu:
        ts = tn // 128
        x4 = x.reshape(B, C, hw // 128, 128)
        grid = (pl.cdiv(B, bb), pl.cdiv(hw // 128, ts))
        out4 = pl.pallas_call(
            _conv1x1_vpu_kernel,
            out_shape=jax.ShapeDtypeStruct((B, C, hw // 128, 128), x.dtype),
            grid_spec=pl.GridSpec(
                grid=grid,
                in_specs=[
                    # Tiny CxC weight as scalars in SMEM (read per-element in kernel).
                    pl.BlockSpec(memory_space=pltpu.MemorySpace.SMEM),
                    pl.BlockSpec((bb, C, ts, 128), lambda b, n: (b, 0, n, 0)),
                ],
                out_specs=pl.BlockSpec((bb, C, ts, 128), lambda b, n: (b, 0, n, 0)),
            ),
            compiler_params=cparams,
            cost_estimate=cost,
        )(w.astype(jnp.float32), x4)
        return out4.reshape(B, C, H, W)

    x3 = x.reshape(B, C, hw)
    grid = (pl.cdiv(B, bb), pl.cdiv(hw, tn))
    out3 = pl.pallas_call(
        _conv1x1_mxu_kernel,
        out_shape=jax.ShapeDtypeStruct((B, C, hw), x.dtype),
        grid_spec=pl.GridSpec(
            grid=grid,
            in_specs=[
                # CxC weight: same tiny block at every grid point -> stays in VMEM.
                pl.BlockSpec((C, C), lambda b, n: (0, 0)),
                pl.BlockSpec((bb, C, tn), lambda b, n: (b, 0, n)),
            ],
            out_specs=pl.BlockSpec((bb, C, tn), lambda b, n: (b, 0, n)),
        ),
        compiler_params=cparams,
        cost_estimate=cost,
    )(w.astype(x.dtype), x3)  # cast w so a f32 weight never upcasts a bf16 tile
    return out3.reshape(B, C, H, W)


def invertible_1x1_conv_forward(x, w):
    """Equivalent of Invertible1x1Conv.forward (lu_factorize=False)."""
    # TODO(synk): lu_factorize=True weight reconstruction (P @ L @ U) is plain CxC
    # JAX math outside the kernel; the same kernel then applies unchanged.
    return _run_conv1x1(x, w)


def invertible_1x1_conv_inverse(z, w):
    """Equivalent of Invertible1x1Conv.inverse: same kernel driven with W^-1."""
    w_inv = jnp.linalg.inv(w.astype(jnp.float32)).astype(w.dtype)
    return _run_conv1x1(z, w_inv)


if __name__ == "__main__":
    key = jax.random.PRNGKey(0)

    def ref_conv1x1(x, w):
        # F.conv2d(x, w.view(C, C, 1, 1)) == channel einsum.
        return jnp.einsum("oc,bchw->bohw", w, x)

    # Case 1: module-style tiny config (C=4 -> VPU broadcast-FMA path) + inverse round-trip.
    k0, k1, key = jax.random.split(key, 3)
    B, C, H, W = 2, 4, 16, 16
    w = jnp.linalg.qr(jax.random.normal(k0, (C, C), dtype=jnp.float32))[0]
    x = jax.random.normal(k1, (B, C, H, W), dtype=jnp.float32)
    y = invertible_1x1_conv_forward(x, w)
    jax.block_until_ready(y)
    assert y.shape == x.shape and y.dtype == x.dtype
    err = float(jnp.max(jnp.abs(y - ref_conv1x1(x, w))))
    assert err < 1e-3, f"case1 forward mismatch: {err}"
    x_rec = invertible_1x1_conv_inverse(y, w)
    jax.block_until_ready(x_rec)
    rt = float(jnp.max(jnp.abs(x_rec - x)))
    assert rt < 2e-3, f"case1 inverse round-trip mismatch: {rt}"

    # Case 2: C>=8, H*W not a multiple of 128 -> MXU path, full-extent lane block.
    k0, k1, key = jax.random.split(key, 3)
    B, C, H, W = 1, 16, 24, 24
    w = jnp.linalg.qr(jax.random.normal(k0, (C, C), dtype=jnp.float32))[0]
    x = jax.random.normal(k1, (B, C, H, W), dtype=jnp.float32)
    y = invertible_1x1_conv_forward(x, w)
    jax.block_until_ready(y)
    err = float(jnp.max(jnp.abs(y - ref_conv1x1(x, w))))
    assert err < 2e-3, f"case2 forward mismatch: {err}"

    # Case 3: larger H*W -> ~2 MiB lane tiles, cdiv grid with a masked ragged tail (MXU path).
    k0, k1, key = jax.random.split(key, 3)
    B, C, H, W = 1, 64, 97, 97
    w = jnp.linalg.qr(jax.random.normal(k0, (C, C), dtype=jnp.float32))[0]
    x = jax.random.normal(k1, (B, C, H, W), dtype=jnp.float32)
    y = invertible_1x1_conv_forward(x, w)
    jax.block_until_ready(y)
    err = float(jnp.max(jnp.abs(y - ref_conv1x1(x, w))))
    assert err < 2e-3, f"case3 forward mismatch: {err}"

    print("KERNEL_OK")
</pallas_src>

<mosaic_0001>
module attributes {stable_mosaic.version = 11 : i64} {
  func.func @_conv1x1_vpu_kernel(%arg0: i32, %arg1: i32, %arg2: memref<4x4xf32, #tpu.memory_space<smem>>, %arg3: memref<1x4x2x128xf32, #tpu.memory_space<vmem>>, %arg4: memref<1x4x2x128xf32, #tpu.memory_space<vmem>>) attributes {dimension_semantics = [#tpu.dimension_semantics<parallel>, #tpu.dimension_semantics<parallel>], iteration_bounds = array<i64: 2, 1>, scalar_prefetch = 0 : i64, scratch_operands = 0 : i64, tpu.core_type = #tpu.core_type<tc>, window_params = [{transform_indices = @transform_0, window_bounds = array<i64: 4, 4>}, {transform_indices = @transform_1, window_bounds = array<i64: 1, 4, 2, 128>}, {transform_indices = @transform_2, window_bounds = array<i64: 1, 4, 2, 128>}]} {
    %c0 = arith.constant 0 : index
    %c0_0 = arith.constant 0 : index
    %c0_1 = arith.constant 0 : index
    %c0_2 = arith.constant 0 : index
    %0 = vector.load %arg3[%c0, %c0_0, %c0_1, %c0_2] : memref<1x4x2x128xf32, #tpu.memory_space<vmem>>, vector<1x1x2x128xf32>
    %1 = vector.shape_cast %0 : vector<1x1x2x128xf32> to vector<1x2x128xf32>
    %c0_3 = arith.constant 0 : index
    %c0_4 = arith.constant 0 : index
    %2 = memref.load %arg2[%c0_3, %c0_4] : memref<4x4xf32, #tpu.memory_space<smem>>
    %3 = vector.broadcast %2 : f32 to vector<1x2x128xf32>
    %4 = arith.mulf %1, %3 : vector<1x2x128xf32>
    %c0_5 = arith.constant 0 : index
    %c1 = arith.constant 1 : index
    %c0_6 = arith.constant 0 : index
    %c0_7 = arith.constant 0 : index
    %5 = vector.load %arg3[%c0_5, %c1, %c0_6, %c0_7] : memref<1x4x2x128xf32, #tpu.memory_space<vmem>>, vector<1x1x2x128xf32>
    %6 = vector.shape_cast %5 : vector<1x1x2x128xf32> to vector<1x2x128xf32>
    %c0_8 = arith.constant 0 : index
    %c1_9 = arith.constant 1 : index
    %7 = memref.load %arg2[%c0_8, %c1_9] : memref<4x4xf32, #tpu.memory_space<smem>>
    %8 = vector.broadcast %7 : f32 to vector<1x2x128xf32>
    %9 = arith.mulf %6, %8 : vector<1x2x128xf32>
    %10 = arith.addf %4, %9 : vector<1x2x128xf32>
    %c0_10 = arith.constant 0 : index
    %c2 = arith.constant 2 : index
    %c0_11 = arith.constant 0 : index
    %c0_12 = arith.constant 0 : index
    %11 = vector.load %arg3[%c0_10, %c2, %c0_11, %c0_12] : memref<1x4x2x128xf32, #tpu.memory_space<vmem>>, vector<1x1x2x128xf32>
    %12 = vector.shape_cast %11 : vector<1x1x2x128xf32> to vector<1x2x128xf32>
    %c0_13 = arith.constant 0 : index
    %c2_14 = arith.constant 2 : index
    %13 = memref.load %arg2[%c0_13, %c2_14] : memref<4x4xf32, #tpu.memory_space<smem>>
    %14 = vector.broadcast %13 : f32 to vector<1x2x128xf32>
    %15 = arith.mulf %12, %14 : vector<1x2x128xf32>
    %16 = arith.addf %10, %15 : vector<1x2x128xf32>
    %c0_15 = arith.constant 0 : index
    %c3 = arith.constant 3 : index
    %c0_16 = arith.constant 0 : index
    %c0_17 = arith.constant 0 : index
    %17 = vector.load %arg3[%c0_15, %c3, %c0_16, %c0_17] : memref<1x4x2x128xf32, #tpu.memory_space<vmem>>, vector<1x1x2x128xf32>
    %18 = vector.shape_cast %17 : vector<1x1x2x128xf32> to vector<1x2x128xf32>
    %c0_18 = arith.constant 0 : index
    %c3_19 = arith.constant 3 : index
    %19 = memref.load %arg2[%c0_18, %c3_19] : memref<4x4xf32, #tpu.memory_space<smem>>
    %20 = vector.broadcast %19 : f32 to vector<1x2x128xf32>
    %21 = arith.mulf %18, %20 : vector<1x2x128xf32>
    %22 = arith.addf %16, %21 : vector<1x2x128xf32>
    %c0_20 = arith.constant 0 : index
    %c0_21 = arith.constant 0 : index
    %c0_22 = arith.constant 0 : index
    %c0_23 = arith.constant 0 : index
    %23 = vector.load %arg4[%c0_20, %c0_21, %c0_22, %c0_23] : memref<1x4x2x128xf32, #tpu.memory_space<vmem>>, vector<1x1x2x128xf32>
    %24 = vector.shape_cast %23 : vector<1x1x2x128xf32> to vector<1x2x128xf32>
    %25 = vector.shape_cast %22 : vector<1x2x128xf32> to vector<1x1x2x128xf32>
    tpu.vector_store %arg4[%c0_20, %c0_21, %c0_22, %c0_23], %25 {strides = array<i32>} : memref<1x4x2x128xf32, #tpu.memory_space<vmem>>, vector<1x1x2x128xf32>,
    %c0_24 = arith.constant 0 : index
    %c0_25 = arith.constant 0 : index
    %c0_26 = arith.constant 0 : index
    %c0_27 = arith.constant 0 : index
    %26 = vector.load %arg3[%c0_24, %c0_25, %c0_26, %c0_27] : memref<1x4x2x128xf32, #tpu.memory_space<vmem>>, vector<1x1x2x128xf32>
    %27 = vector.shape_cast %26 : vector<1x1x2x128xf32> to vector<1x2x128xf32>
    %c1_28 = arith.constant 1 : index
    %c0_29 = arith.constant 0 : index
    %28 = memref.load %arg2[%c1_28, %c0_29] : memref<4x4xf32, #tpu.memory_space<smem>>
    %29 = vector.broadcast %28 : f32 to vector<1x2x128xf32>
    %30 = arith.mulf %27, %29 : vector<1x2x128xf32>
    %c0_30 = arith.constant 0 : index
    %c1_31 = arith.constant 1 : index
    %c0_32 = arith.constant 0 : index
    %c0_33 = arith.constant 0 : index
    %31 = vector.load %arg3[%c0_30, %c1_31, %c0_32, %c0_33] : memref<1x4x2x128xf32, #tpu.memory_space<vmem>>, vector<1x1x2x128xf32>
    %32 = vector.shape_cast %31 : vector<1x1x2x128xf32> to vector<1x2x128xf32>
    %c1_34 = arith.constant 1 : index
    %c1_35 = arith.constant 1 : index
    %33 = memref.load %arg2[%c1_34, %c1_35] : memref<4x4xf32, #tpu.memory_space<smem>>
    %34 = vector.broadcast %33 : f32 to vector<1x2x128xf32>
    %35 = arith.mulf %32, %34 : vector<1x2x128xf32>
    %36 = arith.addf %30, %35 : vector<1x2x128xf32>
    %c0_36 = arith.constant 0 : index
    %c2_37 = arith.constant 2 : index
    %c0_38 = arith.constant 0 : index
    %c0_39 = arith.constant 0 : index
    %37 = vector.load %arg3[%c0_36, %c2_37, %c0_38, %c0_39] : memref<1x4x2x128xf32, #tpu.memory_space<vmem>>, vector<1x1x2x128xf32>
    %38 = vector.shape_cast %37 : vector<1x1x2x128xf32> to vector<1x2x128xf32>
    %c1_40 = arith.constant 1 : index
    %c2_41 = arith.constant 2 : index
    %39 = memref.load %arg2[%c1_40, %c2_41] : memref<4x4xf32, #tpu.memory_space<smem>>
    %40 = vector.broadcast %39 : f32 to vector<1x2x128xf32>
    %41 = arith.mulf %38, %40 : vector<1x2x128xf32>
    %42 = arith.addf %36, %41 : vector<1x2x128xf32>
    %c0_42 = arith.constant 0 : index
    %c3_43 = arith.constant 3 : index
    %c0_44 = arith.constant 0 : index
    %c0_45 = arith.constant 0 : index
    %43 = vector.load %arg3[%c0_42, %c3_43, %c0_44, %c0_45] : memref<1x4x2x128xf32, #tpu.memory_space<vmem>>, vector<1x1x2x128xf32>
    %44 = vector.shape_cast %43 : vector<1x1x2x128xf32> to vector<1x2x128xf32>
    %c1_46 = arith.constant 1 : index
    %c3_47 = arith.constant 3 : index
    %45 = memref.load %arg2[%c1_46, %c3_47] : memref<4x4xf32, #tpu.memory_space<smem>>
    %46 = vector.broadcast %45 : f32 to vector<1x2x128xf32>
    %47 = arith.mulf %44, %46 : vector<1x2x128xf32>
    %48 = arith.addf %42, %47 : vector<1x2x128xf32>
    %c0_48 = arith.constant 0 : index
    %c1_49 = arith.constant 1 : index
    %c0_50 = arith.constant 0 : index
    %c0_51 = arith.constant 0 : index
    %49 = vector.load %arg4[%c0_48, %c1_49, %c0_50, %c0_51] : memref<1x4x2x128xf32, #tpu.memory_space<vmem>>, vector<1x1x2x128xf32>
    %50 = vector.shape_cast %49 : vector<1x1x2x128xf32> to vector<1x2x128xf32>
    %51 = vector.shape_cast %48 : vector<1x2x128xf32> to vector<1x1x2x128xf32>
    tpu.vector_store %arg4[%c0_48, %c1_49, %c0_50, %c0_51], %51 {strides = array<i32>} : memref<1x4x2x128xf32, #tpu.memory_space<vmem>>, vector<1x1x2x128xf32>,
    %c0_52 = arith.constant 0 : index
    %c0_53 = arith.constant 0 : index
    %c0_54 = arith.constant 0 : index
    %c0_55 = arith.constant 0 : index
    %52 = vector.load %arg3[%c0_52, %c0_53, %c0_54, %c0_55] : memref<1x4x2x128xf32, #tpu.memory_space<vmem>>, vector<1x1x2x128xf32>
    %53 = vector.shape_cast %52 : vector<1x1x2x128xf32> to vector<1x2x128xf32>
    %c2_56 = arith.constant 2 : index
    %c0_57 = arith.constant 0 : index
    %54 = memref.load %arg2[%c2_56, %c0_57] : memref<4x4xf32, #tpu.memory_space<smem>>
    %55 = vector.broadcast %54 : f32 to vector<1x2x128xf32>
    %56 = arith.mulf %53, %55 : vector<1x2x128xf32>
    %c0_58 = arith.constant 0 : index
    %c1_59 = arith.constant 1 : index
    %c0_60 = arith.constant 0 : index
    %c0_61 = arith.constant 0 : index
    %57 = vector.load %arg3[%c0_58, %c1_59, %c0_60, %c0_61] : memref<1x4x2x128xf32, #tpu.memory_space<vmem>>, vector<1x1x2x128xf32>
    %58 = vector.shape_cast %57 : vector<1x1x2x128xf32> to vector<1x2x128xf32>
    %c2_62 = arith.constant 2 : index
    %c1_63 = arith.constant 1 : index
    %59 = memref.load %arg2[%c2_62, %c1_63] : memref<4x4xf32, #tpu.memory_space<smem>>
    %60 = vector.broadcast %59 : f32 to vector<1x2x128xf32>
    %61 = arith.mulf %58, %60 : vector<1x2x128xf32>
    %62 = arith.addf %56, %61 : vector<1x2x128xf32>
    %c0_64 = arith.constant 0 : index
    %c2_65 = arith.constant 2 : index
    %c0_66 = arith.constant 0 : index
    %c0_67 = arith.constant 0 : index
    %63 = vector.load %arg3[%c0_64, %c2_65, %c0_66, %c0_67] : memref<1x4x2x128xf32, #tpu.memory_space<vmem>>, vector<1x1x2x128xf32>
    %64 = vector.shape_cast %63 : vector<1x1x2x128xf32> to vector<1x2x128xf32>
    %c2_68 = arith.constant 2 : index
    %c2_69 = arith.constant 2 : index
    %65 = memref.load %arg2[%c2_68, %c2_69] : memref<4x4xf32, #tpu.memory_space<smem>>
    %66 = vector.broadcast %65 : f32 to vector<1x2x128xf32>
    %67 = arith.mulf %64, %66 : vector<1x2x128xf32>
    %68 = arith.addf %62, %67 : vector<1x2x128xf32>
    %c0_70 = arith.constant 0 : index
    %c3_71 = arith.constant 3 : index
    %c0_72 = arith.constant 0 : index
    %c0_73 = arith.constant 0 : index
    %69 = vector.load %arg3[%c0_70, %c3_71, %c0_72, %c0_73] : memref<1x4x2x128xf32, #tpu.memory_space<vmem>>, vector<1x1x2x128xf32>
    %70 = vector.shape_cast %69 : vector<1x1x2x128xf32> to vector<1x2x128xf32>
    %c2_74 = arith.constant 2 : index
    %c3_75 = arith.constant 3 : index
    %71 = memref.load %arg2[%c2_74, %c3_75] : memref<4x4xf32, #tpu.memory_space<smem>>
    %72 = vector.broadcast %71 : f32 to vector<1x2x128xf32>
    %73 = arith.mulf %70, %72 : vector<1x2x128xf32>
    %74 = arith.addf %68, %73 : vector<1x2x128xf32>
    %c0_76 = arith.constant 0 : index
    %c2_77 = arith.constant 2 : index
    %c0_78 = arith.constant 0 : index
    %c0_79 = arith.constant 0 : index
    %75 = vector.load %arg4[%c0_76, %c2_77, %c0_78, %c0_79] : memref<1x4x2x128xf32, #tpu.memory_space<vmem>>, vector<1x1x2x128xf32>
    %76 = vector.shape_cast %75 : vector<1x1x2x128xf32> to vector<1x2x128xf32>
    %77 = vector.shape_cast %74 : vector<1x2x128xf32> to vector<1x1x2x128xf32>
    tpu.vector_store %arg4[%c0_76, %c2_77, %c0_78, %c0_79], %77 {strides = array<i32>} : memref<1x4x2x128xf32, #tpu.memory_space<vmem>>, vector<1x1x2x128xf32>,
    %c0_80 = arith.constant 0 : index
    %c0_81 = arith.constant 0 : index
    %c0_82 = arith.constant 0 : index
    %c0_83 = arith.constant 0 : index
    %78 = vector.load %arg3[%c0_80, %c0_81, %c0_82, %c0_83] : memref<1x4x2x128xf32, #tpu.memory_space<vmem>>, vector<1x1x2x128xf32>
    %79 = vector.shape_cast %78 : vector<1x1x2x128xf32> to vector<1x2x128xf32>
    %c3_84 = arith.constant 3 : index
    %c0_85 = arith.constant 0 : index
    %80 = memref.load %arg2[%c3_84, %c0_85] : memref<4x4xf32, #tpu.memory_space<smem>>
    %81 = vector.broadcast %80 : f32 to vector<1x2x128xf32>
    %82 = arith.mulf %79, %81 : vector<1x2x128xf32>
    %c0_86 = arith.constant 0 : index
    %c1_87 = arith.constant 1 : index
    %c0_88 = arith.constant 0 : index
    %c0_89 = arith.constant 0 : index
    %83 = vector.load %arg3[%c0_86, %c1_87, %c0_88, %c0_89] : memref<1x4x2x128xf32, #tpu.memory_space<vmem>>, vector<1x1x2x128xf32>
    %84 = vector.shape_cast %83 : vector<1x1x2x128xf32> to vector<1x2x128xf32>
    %c3_90 = arith.constant 3 : index
    %c1_91 = arith.constant 1 : index
    %85 = memref.load %arg2[%c3_90, %c1_91] : memref<4x4xf32, #tpu.memory_space<smem>>
    %86 = vector.broadcast %85 : f32 to vector<1x2x128xf32>
    %87 = arith.mulf %84, %86 : vector<1x2x128xf32>
    %88 = arith.addf %82, %87 : vector<1x2x128xf32>
    %c0_92 = arith.constant 0 : index
    %c2_93 = arith.constant 2 : index
    %c0_94 = arith.constant 0 : index
    %c0_95 = arith.constant 0 : index
    %89 = vector.load %arg3[%c0_92, %c2_93, %c0_94, %c0_95] : memref<1x4x2x128xf32, #tpu.memory_space<vmem>>, vector<1x1x2x128xf32>
    %90 = vector.shape_cast %89 : vector<1x1x2x128xf32> to vector<1x2x128xf32>
    %c3_96 = arith.constant 3 : index
    %c2_97 = arith.constant 2 : index
    %91 = memref.load %arg2[%c3_96, %c2_97] : memref<4x4xf32, #tpu.memory_space<smem>>
    %92 = vector.broadcast %91 : f32 to vector<1x2x128xf32>
    %93 = arith.mulf %90, %92 : vector<1x2x128xf32>
    %94 = arith.addf %88, %93 : vector<1x2x128xf32>
    %c0_98 = arith.constant 0 : index
    %c3_99 = arith.constant 3 : index
    %c0_100 = arith.constant 0 : index
    %c0_101 = arith.constant 0 : index
    %95 = vector.load %arg3[%c0_98, %c3_99, %c0_100, %c0_101] : memref<1x4x2x128xf32, #tpu.memory_space<vmem>>, vector<1x1x2x128xf32>
    %96 = vector.shape_cast %95 : vector<1x1x2x128xf32> to vector<1x2x128xf32>
    %c3_102 = arith.constant 3 : index
    %c3_103 = arith.constant 3 : index
    %97 = memref.load %arg2[%c3_102, %c3_103] : memref<4x4xf32, #tpu.memory_space<smem>>
    %98 = vector.broadcast %97 : f32 to vector<1x2x128xf32>
    %99 = arith.mulf %96, %98 : vector<1x2x128xf32>
    %100 = arith.addf %94, %99 : vector<1x2x128xf32>
    %c0_104 = arith.constant 0 : index
    %c3_105 = arith.constant 3 : index
    %c0_106 = arith.constant 0 : index
    %c0_107 = arith.constant 0 : index
    %101 = vector.load %arg4[%c0_104, %c3_105, %c0_106, %c0_107] : memref<1x4x2x128xf32, #tpu.memory_space<vmem>>, vector<1x1x2x128xf32>
    %102 = vector.shape_cast %101 : vector<1x1x2x128xf32> to vector<1x2x128xf32>
    %103 = vector.shape_cast %100 : vector<1x2x128xf32> to vector<1x1x2x128xf32>
    tpu.vector_store %arg4[%c0_104, %c3_105, %c0_106, %c0_107], %103 {strides = array<i32>} : memref<1x4x2x128xf32, #tpu.memory_space<vmem>>, vector<1x1x2x128xf32>,
    return
  }
  func.func @transform_0(%arg0: i32, %arg1: i32) -> (i32, i32) {
    %c0_i32 = arith.constant 0 : i32
    %c0_i32_0 = arith.constant 0 : i32
    %c0_i32_1 = arith.constant 0 : i32
    return %c0_i32, %c0_i32_0 : i32, i32
  }
  func.func @transform_1(%arg0: i32, %arg1: i32) -> (i32, i32, i32, i32) {
    %c0_i32 = arith.constant 0 : i32
    %c0_i32_0 = arith.constant 0 : i32
    %c0_i32_1 = arith.constant 0 : i32
    return %arg0, %c0_i32, %arg1, %c0_i32_0 : i32, i32, i32, i32
  }
  func.func @transform_2(%arg0: i32, %arg1: i32) -> (i32, i32, i32, i32) {
    %c0_i32 = arith.constant 0 : i32
    %c0_i32_0 = arith.constant 0 : i32
    %c0_i32_1 = arith.constant 0 : i32
    return %arg0, %c0_i32, %arg1, %c0_i32_0 : i32, i32, i32, i32
  }
}

</mosaic_0001>

<bundles_post_ra>
// kernel: tpu_custom_call.1
= control target key start
LH: loop header
LB: loop body
LE: loop exit
PB: predicated region body
PF: predicated region fallthrough
CT: control target
= control target key end

     0   :  { %7 = vsyncpa [#allocation5], 0  ;;  %s921_s0 = inlined_call_operand.hbm [shape: f32[4,4], index: 0, kind: input, shape index: {}]   ;;  %s922_s1 = inlined_call_operand.hbm [shape: f32[2,4,2,128], index: 1, kind: input, shape index: {}]   ;;  %s923_s2 = inlined_call_operand.hbm [shape: f32[2,4,2,128], index: 2, kind: output, shape index: {}]  }
   0x1   :  { %8 = vsyncpa [#allocation3], 0 }
   0x2   :  { %10 = vsyncpa [#allocation3 + $0x1], 0 }
   0x3   :  { %11 = vsyncpa [#allocation4], 0 }
   0x4   :  { %13 = vsyncpa [#allocation4 + $0x1], 0  ;;  %s668_s9 = smov 0   ;;  %s670_s10 = smov 0  }
   0x5   :  { %s672_s11 = smov 0   ;;  %s674_s12 = smov 0  }
   0x6   :  { %s676_s13 = smov 0   ;;  %s678_s14 = smov 0  }
   0x7 LB: > { %s389_s15 = sadd.s32 4294967295, %s644_s14   ;;  %s390_s16 = sadd.s32 4294967294, %s644_s14   ;;  %s644_s14 = sphi %s678_s14, %s19_s14   ;;  %s640_s13 = sphi %s676_s13, %s943_s13   ;;  %s636_s12 = sphi %s674_s12, %s942_s12   ;;  %s632_s11 = sphi %s672_s11, %s941_s11   ;;  %s628_s10 = sphi %s670_s10, %s940_s10   ;;  %s624_s9 = sphi %s668_s9, %s939_s9  }
   0x8   : > { %s61_s17 = sadd.s32 1, %s632_s11  ;;  %p68_p0 = scmp.ne.s32.totalorder %s632_s11, %s628_s10 }
   0x9   : > { %p69_p1 = scmp.eq.s32.totalorder %s644_s14, 0  ;;  %p74_p2 = scmp.ne.s32.totalorder %s628_s10, %s624_s9 }
   0xa   : > { %p706_p3 = scmp.eq.s32.totalorder %s389_s15, 0  ;;  %p100_p4 = scmp.eq.s32.totalorder %s389_s15, 1 }
   0xb   : > { %p70_p5 = por %p69_p1, %p68_p0  ;;  %p106_p6 = scmp.eq.s32.totalorder %s390_s16, 1 }
   0xc   : > { %s928_s18 = scalar_select %p706_p3, 1, 0 }
   0xd   : > { %p712_p7 = por %p706_p3, %p74_p2  ;;  %p716_p8 = por %p100_p4, %p68_p0 }
   0xe   : > { %p720_p9 = por %p106_p6, %p74_p2  ;;  %p391_p10 = scmp.ge.s32.totalorder %s644_s14, 1 }
   0xf   : > { %s929_s19 = scalar_select %p712_p7, 1, 0 }
  0x10   : > { %s930_s20 = scalar_select %p716_p8, 1, 0 }
  0x11   : > { %s931_s21 = scalar_select %p720_p9, 1, 0 }
  0x12   : > { %p113_p11 = scmp.lt.s32.totalorder %s644_s14, 3  ;;  %p459_p1 = scmp.lt.s32.totalorder %s644_s14, 2 }
  0x13   : > { %s135_s23 = sand.u32 1, %s632_s11   ;;  %s31_s25 = sadd.s32 1, %s640_s13 }
  0x14   : > { %p727_p13 = pnand %p391_p10, %p113_p11  ;;  %p735_p0 = pnand %p459_p1, %p70_p5 }
  0x15   : > { %s394_s26 = sshll.u32 %s135_s23, 3  ;;  %p33_p4 = scmp.ge.s32.totalorder %s31_s25, 2 }
  0x16   : > { %p446_p7 = pneg %p727_p13  ;;  %s515_s29 = scalar_lea.hbm %s921_s0, 64 }
  0x17   : > { %p516_p6 = scmp.ne.s32.totalorder %s921_s0, %s515_s29  ;;  %p522_p5 = scmp.lt.u32.totalorder %s515_s29, %s921_s0 }
  0x18   : > { %p447_p2 = pnand %p446_p7, %p706_p3 }
  0x1a   : > { %p517_p10 = pneg %p447_p2 }
  0x1c   : > { %p518_p11 = pnand %p517_p10, %p516_p6 }
  0x1e   : > { %p519_p12 = pneg %p518_p11 }
  0x20   : > { %p524_p1 = pnand %p522_p5, %p519_p12 }
  0x22   : > { %527 = shalt.err (!%p524_p1)
}
  0x23   : > { %s646_s6 = smov [#allocation2]   ;;  %s945_s25 = smov (%p33_p4, %s31_s25), 0 }
  0x24   : > { %449 = dma.hbm_to_smem (!%p447_p2), %s921_s0, 64, %s646_s6, [#allocation5]  }
  0x25   : > { %s436_s15 = sshll.u32 %s640_s13, 7  ;;  %s56_s16 = ssub.s32 %s640_s13, %s945_s25 }
  0x26   : > { %s762_s29 = scalar_lea.hbm %s922_s1, %s436_s15  ;;  %p59_p7 = scmp.eq.s32.totalorder %s56_s16, 0 }
  0x27   : > { %s139_s30 = scalar_lea.vmem [#allocation6], %s394_s26  ;;  %s771_s5 = scalar_lea.sflag [#allocation3], %s135_s23 }
  0x28   : > { %s147_s3 = sshll.u32 %s139_s30, 4  ;;  %s528_s6 = scalar_lea.hbm %s762_s29, 128  ;;  %s764_s3 = int_to_ptr.vmem [resolvable:$true] %s147_s3 }
  0x29   : > { %s769_s4 = scalar_select %p59_p7, %s632_s11, %s61_s17  }
  0x2a   : > { %p529_p12 = scmp.ne.s32.totalorder %s762_s29, %s528_s6  ;;  %p530_p2 = pneg %p735_p0 }
  0x2b   : > { %s533_s26 = scalar_lea.hbm %s922_s1, 256  ;;  %p534_p10 = scmp.lt.u32.totalorder %s762_s29, %s922_s1 }
  0x2c   : > { %p531_p4 = pnand %p530_p2, %p529_p12  ;;  %p535_p11 = scmp.lt.u32.totalorder %s533_s26, %s528_s6 }
  0x2d   : > { %p537_p1 = scmp.lt.u32.totalorder %s528_s6, %s762_s29 }
  0x2e   : > { %p532_p6 = pneg %p531_p4  ;;  %p536_p5 = por %p535_p11, %p534_p10 }
  0x30   : > { %p538_p7 = por %p537_p1, %p536_p5 }
  0x32   : > { %p539_p9 = pnand %p538_p7, %p532_p6 }
  0x34   : > { %542 = shalt.err (!%p539_p9)
}
  0x35   : > { %s543_s17 = scalar_lea.vmem %s764_s3, 128  ;;  %s647_s23 = smov [#allocation6]  }
  0x36   : > { %p544_p12 = scmp.ne.s32.totalorder %s764_s3, %s543_s17  ;;  %s548_s27 = sshll.u32 %s647_s23, 4  ;;  %s549_s27 = int_to_ptr.vmem [resolvable:$false] %s548_s27 }
  0x37   : > { %s550_s28 = scalar_lea.vmem %s549_s27, 256  ;;  %p551_p3 = scmp.lt.s32.totalorder %s764_s3, %s549_s27 }
  0x38   : > { %p546_p4 = pnand %p544_p12, %p530_p2  ;;  %p552_p10 = scmp.lt.s32.totalorder %s550_s28, %s543_s17 }
  0x3a   : > { %p547_p8 = pneg %p546_p4  ;;  %p553_p11 = por %p552_p10, %p551_p3 }
  0x3c   : > { %p554_p5 = pnand %p553_p11, %p547_p8 }
  0x3e   : > { %557 = shalt.err (!%p554_p5)
}
  0x3f   : > { %s648_s30 = smov 32   ;;  %s649_s6 = smov 2  }
  0x40   : > { %453 = dma.hbm_to_vmem [thread:$0]  (!%p735_p0), %s762_s29, 128, %s764_s3, %s771_s5, %s648_s30, %s648_s30, %s649_s6  }
  0x41   : > { %159 = sbr.rel (%p727_p13) target bundleno = 117 (0x75), region = 28  ;;  %p934_p9 = scmp.ne.s32.totalorder (!%p727_p13), %s928_s18, 0 }
  0x48   : > { %611 = dma.done.wait (%p934_p9), [#allocation5], 64  }
  0x49   : > { %613 = vsyncadd (%p934_p9), [#allocation5], 4294967232  ;;  %s806_s7 = sand.u32 1, %s628_s10   ;;  %p935_p3 = scmp.ne.s32.totalorder %s929_s19, 0 }
  0x4a   : > { %s399_s8 = sshll.u32 %s806_s7, 3  ;;  %s166_s26 = scalar_lea.sflag [#allocation3], %s806_s7 }
  0x4b   : > { %s812_s24 = scalar_lea.vmem [#allocation6], %s399_s8 }
  0x4c   : > { %615 = dma.done.wait (%p935_p3), %s166_s26, 128  }
  0x4d   : > { %617 = vsyncadd (%p935_p3), %s166_s26, 4294967168 }
  0x4e   : > { %174 = sfence }
  0x4f   : > { %s192_s18 = sld [smem:[#allocation2]]  ;;  %s402_s22 = sld [smem:[#allocation2 + $0x1]]  ;;  %v191_v0 = vld [vmem:[%s812_s24] sm:$0x3]  ;;  %v401_v1 = vld [vmem:[%s812_s24 + $0x2] sm:$0x3] }
  0x50   : > { %s404_s29 = sld [smem:[#allocation2 + $0x2]]  ;;  %s406_s3 = sld [smem:[#allocation2 + $0x3]]  ;;  %v403_v3 = vld [vmem:[%s812_s24 + $0x4] sm:$0x3]  ;;  %v405_v4 = vld [vmem:[%s812_s24 + $0x6] sm:$0x3] }
  0x51   : > { %s407_s5 = sld [smem:[#allocation2 + $0x80]]  ;;  %s409_s15 = sld [smem:[#allocation2 + $0x81]]  ;;  %v214_v7 = vld [vmem:[%s812_s24] sm:$0x3]  ;;  %v408_v11 = vld [vmem:[%s812_s24 + $0x2] sm:$0x3] }
  0x52   : > { %s820_s16 = sld [smem:[#allocation2 + $0x82]]  ;;  %s822_s19 = sld [smem:[#allocation2 + $0x83]]  ;;  %v410_v12 = vld [vmem:[%s812_s24 + $0x4] sm:$0x3]  ;;  %v412_v15 = vld [vmem:[%s812_s24 + $0x6] sm:$0x3] }
  0x53   : > { %s826_s17 = sld [smem:[#allocation2 + $0x100]]  ;;  %s829_s23 = sld [smem:[#allocation2 + $0x101]]  ;;  %v235_v20 = vld [vmem:[%s812_s24] sm:$0x3]  ;;  %v416_v24 = vld [vmem:[%s812_s24 + $0x2] sm:$0x3] }
  0x54   : > { %s831_s27 = sld [smem:[#allocation2 + $0x102]]  ;;  %s835_s28 = sld [smem:[#allocation2 + $0x103]]  ;;  %v418_v25 = vld [vmem:[%s812_s24 + $0x4] sm:$0x3]  ;;  %v420_v30 = vld [vmem:[%s812_s24 + $0x6] sm:$0x3] }
  0x55   : > { %v193_v2 = vstv %s192_s18  ;;  %v198_v6 = vstv %s402_s22  ;;  %s838_s30 = sld [smem:[#allocation2 + $0x180]]  ;;  %s840_s6 = sld [smem:[#allocation2 + $0x181]]  ;;  %v256_v35 = vld [vmem:[%s812_s24] sm:$0x3]  ;;  %v424_v36 = vld [vmem:[%s812_s24 + $0x2] sm:$0x3] }
  0x56   : > { %v194_v5 = vmul.f32 %v193_v2, %v191_v0  ;;  %v199_v8 = vmul.f32 %v401_v1, %v198_v6  ;;  %v204_v9 = vstv %s404_s29  ;;  %v210_v10 = vstv %s406_s3  ;;  %s843_s26 = sld [smem:[#allocation2 + $0x182]]  ;;  %s849_s18 = sld [smem:[#allocation2 + $0x183]]  ;;  %v426_v41 = vld [vmem:[%s812_s24 + $0x4] sm:$0x3]  ;;  %v428_v46 = vld [vmem:[%s812_s24 + $0x6] sm:$0x3] }
  0x57   : > { %v205_v13 = vmul.f32 %v403_v3, %v204_v9  ;;  %v216_v14 = vstv %s407_s5  ;;  %v211_v17 = vmul.f32 %v405_v4, %v210_v10  ;;  %v220_v19 = vstv %s409_s15  ;;  %s190_s22 = scalar_lea.vmem [#allocation7], %s399_s8  ;;  %s437_s3 = sshll.u32 %s636_s12, 7 }
  0x58   : > { %v200_v16 = vadd.f32 %v199_v8, %v194_v5  ;;  %v217_v18 = vmul.f32 %v216_v14, %v214_v7  ;;  %v221_v21 = vmul.f32 %v408_v11, %v220_v19  ;;  %v225_v22 = vstv %s820_s16  ;;  %s292_s29 = sshll.u32 %s190_s22, 4  ;;  %s872_s5 = scalar_lea.hbm %s923_s2, %s437_s3  ;;  %s867_s29 = int_to_ptr.vmem [resolvable:$true] %s292_s29 }
  0x59   : > { %v230_v23 = vstv %s822_s19  ;;  %v226_v27 = vmul.f32 %v410_v12, %v225_v22  ;;  %v237_v29 = vstv %s826_s17  ;;  %v241_v33 = vstv %s829_s23  ;;  %s278_s15 = scalar_lea.sflag [#allocation4], %s806_s7  ;;  %s558_s16 = scalar_lea.vmem %s867_s29, 128 }
  0x5a   : > { %v206_v26 = vadd.f32 %v205_v13, %v200_v16  ;;  %v231_v28 = vmul.f32 %v412_v15, %v230_v23  ;;  %v222_v31 = vadd.f32 %v221_v21, %v217_v18  ;;  %v238_v32 = vmul.f32 %v237_v29, %v235_v20  ;;  %p559_p8 = scmp.ne.s32.totalorder %s867_s29, %s558_s16  ;;  %p936_p13 = scmp.ne.s32.totalorder %s930_s20, 0 }
  0x5b   : > { %v246_v34 = vstv %s831_s27  ;;  %v242_v38 = vmul.f32 %v416_v24, %v241_v33  ;;  %v251_v40 = vstv %s835_s28  ;;  %v258_v44 = vstv %s838_s30  ;;  %s650_s12 = smov [#allocation7]  }
  0x5c   : > { %v212_v37 = vadd.f32 %v211_v17, %v206_v26  ;;  %v247_v39 = vmul.f32 %v418_v25, %v246_v34  ;;  %v227_v42 = vadd.f32 %v226_v27, %v222_v31  ;;  %v252_v43 = vmul.f32 %v420_v30, %v251_v40  ;;  %p560_p0 = pnand %p559_p8, %p936_p13  ;;  %s562_s19 = sshll.u32 %s650_s12, 4  ;;  %s563_s19 = int_to_ptr.vmem [resolvable:$false] %s562_s19 }
  0x5d   : > { %v262_v45 = vstv %s840_s6  ;;  %v243_v47 = vadd.f32 %v242_v38, %v238_v32  ;;  %v259_v48 = vmul.f32 %v258_v44, %v256_v35  ;;  %v267_v50 = vstv %s843_s26  ;;  %s564_s17 = scalar_lea.vmem %s563_s19, 256  ;;  %p565_p6 = scmp.lt.s32.totalorder %s867_s29, %s563_s19 }
  0x5e   : > { %213 = vst [vmem:[%s190_s22] sm:$0x3] %v212_v37  ;;  %v263_v49 = vmul.f32 %v424_v36, %v262_v45  ;;  %v232_v51 = vadd.f32 %v231_v28, %v227_v42  ;;  %v268_v52 = vmul.f32 %v426_v41, %v267_v50  ;;  %v272_v53 = vstv %s849_s18  ;;  %p561_p2 = pneg %p560_p0  ;;  %p566_p1 = scmp.lt.s32.totalorder %s564_s17, %s558_s16 }
  0x5f   : > { %v248_v54 = vadd.f32 %v247_v39, %v243_v47  ;;  %v273_v56 = vmul.f32 %v428_v46, %v272_v53 }
  0x60   : > { %v264_v55 = vadd.f32 %v263_v49, %v259_v48  ;;  %414 = vst [vmem:[%s190_s22 + $0x2] sm:$0x3] %v232_v51  ;;  %p567_p7 = por %p566_p1, %p565_p6 }
  0x61   : > { %v253_v57 = vadd.f32 %v252_v43, %v248_v54 }
  0x62   : > { %v269_v58 = vadd.f32 %v268_v52, %v264_v55  ;;  %p568_p12 = pnand %p567_p7, %p561_p2 }
  0x63   : > { %422 = vst [vmem:[%s190_s22 + $0x4] sm:$0x3] %v253_v57 }
  0x64   : > { %v274_v59 = vadd.f32 %v273_v56, %v269_v58 }
  0x66   : > { %430 = vst [vmem:[%s190_s22 + $0x6] sm:$0x3] %v274_v59 }
  0x67   : > { %571 = shalt.err (!%p568_p12)
}
  0x68   : > { %s572_s23 = scalar_lea.hbm %s872_s5, 128  ;;  %s576_s30 = scalar_lea.hbm %s923_s2, 256 }
  0x69   : > { %p573_p4 = scmp.ne.s32.totalorder %s872_s5, %s572_s23  ;;  %p577_p5 = scmp.lt.u32.totalorder %s872_s5, %s923_s2 }
  0x6a   : > { %p578_p9 = scmp.lt.u32.totalorder %s576_s30, %s572_s23  ;;  %p580_p8 = scmp.lt.u32.totalorder %s572_s23, %s872_s5 }
  0x6b   : > { %p574_p10 = pnand %p573_p4, %p936_p13 }
  0x6c   : > { %p579_p3 = por %p578_p9, %p577_p5 }
  0x6d   : > { %p575_p11 = pneg %p574_p10 }
  0x6e   : > { %p581_p0 = por %p580_p8, %p579_p3 }
  0x70   : > { %p582_p2 = pnand %p581_p0, %p575_p11 }
  0x72   : > { %585 = shalt.err (!%p582_p2)
}
  0x73   : > { %s651_s18 = smov 32   ;;  %s652_s22 = smov 2  }
  0x74   : > { %444 = dma.vmem_to_hbm [thread:$0]  (%p936_p13), %s867_s29, 128, %s872_s5, %s278_s15, %s651_s18, %s651_s18, %s652_s22  }
  0x75 PF: > { %s307_s3 = sand.u32 1, %s624_s9   ;;  %p937_p6 = scmp.ne.s32.totalorder %s931_s21, 0 }
  0x76   : > { %p938_p1 = scmp.ge.s32.totalorder %s644_s14, 2  ;;  %s308_s8 = scalar_lea.sflag [#allocation4], %s307_s3 }
  0x78   : > { %p455_p7 = pnand %p938_p1, %p937_p6 }
  0x7a   : > { %619 = dma.done.wait (!%p455_p7), %s308_s8, 128  }
  0x7b   : > { %621 = vsyncadd (!%p455_p7), %s308_s8, 4294967168  ;;  %s19_s14 = sadd.s32 1, %s644_s14   ;;  %s939_s9 = smov %s628_s10 }
  0x7c   : > { %p16_p12 = scmp.ge.s32.totalorder %s19_s14, 4   ;;  %s940_s10 = smov %s632_s11 }
  0x7d   : > { %s941_s11 = smov %s769_s4  ;;  %s942_s12 = smov %s640_s13 }
  0x7e   : > { %s943_s13 = smov %s945_s25  ;;  %18 = sbr.rel (!%p16_p12) target bundleno = 7 (0x7), region = 84 }
  0x85   :  { %313 = vsyncpa [#allocation3], 1 }
  0x86   :  { %315 = vsyncpa [#allocation3 + $0x1], 1 }
  0x87   :  { %316 = vsyncpa [#allocation4], 1 }
  0x88   :  { %318 = vsyncpa [#allocation4 + $0x1], 1 }
  0x89   :  { %319 = vsyncpa [#allocation5], 1 }
  0x8a   :  { %321 = vsyncpa [#allocation5 + $0x1], 1 }

</bundles_post_ra>
